<compile_context>
chip_gen: v7x
topology: tpu7x:2x2x1
jax: 0.10.0
libtpu: 0.0.40
codegen_flags: <defaults>
</compile_context>

<pallas_src>
import functools

import jax
import jax.numpy as jnp
from jax.experimental import pallas as pl
from jax.experimental.pallas import tpu as pltpu


# ----------------------------------------------------------------------------
# Fused kernel: full MLP forward for one Monte-Carlo sample
# ----------------------------------------------------------------------------
def _fused_net_kernel(x_ref, w1_ref, b1_ref, w2_ref, b2_ref, w3_ref, b3_ref,
                      w45_ref, b45_ref, o_ref, *, half):
    # x_ref:   (1, B, Din)        bf16   (same block reused for every sample)
    # wN_ref:  (1, Din_N, Dout_N) bf16   (per-sample weights)
    # bN_ref:  (1, 1, Dout_N)     f32
    # w45_ref: (1, H2, OUT_PAD)   bf16   cols [0, half)      -> linear4  (y_avg)
    #                                    cols [half, 2*half) -> linear4_2 (rho)
    # o_ref:   (1, B, OUT_PAD)    f32    lane-dense output slab
    mm_dtype = w1_ref.dtype

    x = x_ref[0]                                              # (B, Din) bf16
    h = jnp.dot(x, w1_ref[0], preferred_element_type=jnp.float32) + b1_ref[0]
    h = jnp.maximum(h, 0.0)                                   # (B, 512) f32

    h = jnp.dot(h.astype(mm_dtype), w2_ref[0],
                preferred_element_type=jnp.float32) + b2_ref[0]
    h = jnp.maximum(h, 0.0)                                   # (B, 128) f32

    h = jnp.dot(h.astype(mm_dtype), w3_ref[0],
                preferred_element_type=jnp.float32) + b3_ref[0]
    h = jnp.maximum(h, 0.0)                                   # (B, 128) f32

    y = jnp.dot(h.astype(mm_dtype), w45_ref[0],
                preferred_element_type=jnp.float32) + b45_ref[0]  # (B, OUT_PAD)

    # head 0 (y_avg): clamp to [-1000, 1000] via double ReLU (matches PyTorch)
    y1 = jnp.maximum(y + 1000.0, 0.0) - 1000.0
    y1 = -jnp.maximum(-y1 + 1000.0, 0.0) + 1000.0
    # head 1 (rho): clamp to [-2, 2] via double ReLU
    y2 = jnp.maximum(y + 2.0, 0.0) - 2.0
    y2 = -jnp.maximum(-y2 + 2.0, 0.0) + 2.0

    col = jax.lax.broadcasted_iota(jnp.int32, y.shape, dimension=1)
    o_ref[0] = jnp.where(col < half, y1, y2).astype(o_ref.dtype)


def _fused_forward(x, w1, b1, w2, b2, w3, b3, w45, b45, out_pad, half,
                   mm_dtype=jnp.bfloat16):
    """x: (B, Din) f32; wN/bN sampled per-sample weights -> (S, B, out_pad)."""
    S = w1.shape[0]
    B, Din = x.shape
    H1 = w1.shape[-1]
    H2 = w2.shape[-1]

    x3 = x.astype(mm_dtype).reshape(1, B, Din)
    kernel = functools.partial(_fused_net_kernel, half=half)

    return pl.pallas_call(
        kernel,
        out_shape=jax.ShapeDtypeStruct((S, B, out_pad), jnp.float32),
        grid_spec=pltpu.PrefetchScalarGridSpec(
            num_scalar_prefetch=0,
            grid=(S,),
            in_specs=[
                pl.BlockSpec((1, B, Din), lambda s: (0, 0, 0)),       # x (shared)
                pl.BlockSpec((1, Din, H1), lambda s: (s, 0, 0)),      # w1
                pl.BlockSpec((1, 1, H1), lambda s: (s, 0, 0)),        # b1
                pl.BlockSpec((1, H1, H2), lambda s: (s, 0, 0)),       # w2
                pl.BlockSpec((1, 1, H2), lambda s: (s, 0, 0)),        # b2
                pl.BlockSpec((1, H2, H2), lambda s: (s, 0, 0)),       # w3
                pl.BlockSpec((1, 1, H2), lambda s: (s, 0, 0)),        # b3
                pl.BlockSpec((1, H2, out_pad), lambda s: (s, 0, 0)),  # w4|w5
                pl.BlockSpec((1, 1, out_pad), lambda s: (s, 0, 0)),   # b4|b5
            ],
            out_specs=pl.BlockSpec((1, B, out_pad), lambda s: (s, 0, 0)),
        ),
        compiler_params=pltpu.CompilerParams(
            dimension_semantics=("parallel",),
        ),
    )(x3,
      w1.astype(mm_dtype), b1.reshape(S, 1, H1).astype(jnp.float32),
      w2.astype(mm_dtype), b2.reshape(S, 1, H2).astype(jnp.float32),
      w3.astype(mm_dtype), b3.reshape(S, 1, H2).astype(jnp.float32),
      w45.astype(mm_dtype), b45.astype(jnp.float32))


# ----------------------------------------------------------------------------
# Parameter init + weight sampling (plain JAX glue, matches VariationalLayer)
# ----------------------------------------------------------------------------
def rho_to_sigma(rho):
    return jnp.log(1.0 + jnp.exp(rho))


def init_vlayer_params(key, input_size, output_size, mu_init_1, mu_init_2, rho_init):
    # PyTorch: input_size = input_size + 1 (bias row folded into the matrix)
    in_p1 = input_size + 1
    k_mu, k_rho = jax.random.split(key)
    theta_mu = jax.random.uniform(
        k_mu, (in_p1, output_size), minval=mu_init_1, maxval=mu_init_2,
        dtype=jnp.float32)
    theta_rho = jax.random.uniform(
        k_rho, (in_p1, output_size), minval=rho_init, maxval=rho_init + 1.0,
        dtype=jnp.float32)
    return {"theta_mu": theta_mu, "theta_rho": theta_rho}


def sample_weight(key, params, n_samples):
    mu, rho = params["theta_mu"], params["theta_rho"]
    eps = jax.random.normal(key, (n_samples,) + mu.shape, dtype=jnp.float32)
    w = mu[None] + rho_to_sigma(rho)[None] * eps      # (S, in+1, out)
    return w[:, :-1, :], w[:, -1, :]                  # weight, bias


def init_po_variational_net(key, input_size, output_size):
    hl_sizes = [512, 128]
    mu_init = 0.1
    rho_init = -5.0
    var = -0.0001
    keys = jax.random.split(key, 5)
    return {
        "linear1": init_vlayer_params(keys[0], input_size, hl_sizes[0],
                                      -mu_init, mu_init, rho_init),
        "linear2": init_vlayer_params(keys[1], hl_sizes[0], hl_sizes[1],
                                      -mu_init, mu_init, rho_init),
        "linear3": init_vlayer_params(keys[2], hl_sizes[1], hl_sizes[1],
                                      -mu_init, mu_init, rho_init),
        "linear4": init_vlayer_params(keys[3], hl_sizes[1], output_size,
                                      -mu_init, mu_init, rho_init),
        "linear4_2": init_vlayer_params(keys[4], hl_sizes[1], output_size,
                                        var, var + 0.0002, rho_init - 2.0),
    }


# ----------------------------------------------------------------------------
# POVariationalNet forward
# ----------------------------------------------------------------------------
def po_variational_net_forward(params, x, n_samples, sample_key):
    """x: (B, input_size) -> (y_avg, rho), each (n_samples, B, output_size)."""
    S = n_samples
    ks = jax.random.split(sample_key, 5)
    w1, b1 = sample_weight(ks[0], params["linear1"], S)
    w2, b2 = sample_weight(ks[1], params["linear2"], S)
    w3, b3 = sample_weight(ks[2], params["linear3"], S)
    w4, b4 = sample_weight(ks[3], params["linear4"], S)
    w5, b5 = sample_weight(ks[4], params["linear4_2"], S)

    H2 = w4.shape[1]
    Dout = w4.shape[-1]
    # Pack both output heads into a single lane-dense slab: columns [0, half)
    # hold linear4 (y_avg), columns [half, 2*half) hold linear4_2 (rho).
    # half is a multiple of 64 so the slab width is a multiple of 128.
    half = 64 * ((Dout + 63) // 64)
    out_pad = 2 * half
    w45 = jnp.zeros((S, H2, out_pad), jnp.float32)
    w45 = w45.at[:, :, :Dout].set(w4)
    w45 = w45.at[:, :, half:half + Dout].set(w5)
    b45 = jnp.zeros((S, 1, out_pad), jnp.float32)
    b45 = b45.at[:, :, :Dout].set(b4[:, None, :])
    b45 = b45.at[:, :, half:half + Dout].set(b5[:, None, :])

    out = _fused_forward(x.astype(jnp.float32), w1, b1, w2, b2, w3, b3,
                         w45, b45, out_pad, half)
    y_avg = out[:, :, :Dout]
    rho = out[:, :, half:half + Dout]
    return y_avg, rho


# ----------------------------------------------------------------------------
# Pure-JAX reference (same sampled weights). matmul_dtype=bfloat16 mirrors the
# kernel's MXU input precision for a tight check; float32 for a loose check.
# ----------------------------------------------------------------------------
def _reference_forward(params, x, n_samples, sample_key,
                       matmul_dtype=jnp.float32):
    S = n_samples
    xb = jnp.broadcast_to(x[None, :, :].astype(jnp.float32), (S,) + x.shape)
    ks = jax.random.split(sample_key, 5)
    names = ["linear1", "linear2", "linear3", "linear4", "linear4_2"]
    ws = [sample_weight(k, params[n], S) for k, n in zip(ks, names)]

    def bmm(h, wb):
        w, b = wb
        y = jnp.einsum("sbd,sde->sbe",
                       h.astype(matmul_dtype), w.astype(matmul_dtype),
                       preferred_element_type=jnp.float32)
        return y + b[:, None, :]

    h = jax.nn.relu(bmm(xb, ws[0]))
    h = jax.nn.relu(bmm(h, ws[1]))
    h = jax.nn.relu(bmm(h, ws[2]))
    y = bmm(h, ws[3])
    y = jax.nn.relu(y + 1000.0) - 1000.0
    y = -jax.nn.relu(-y + 1000.0) + 1000.0
    r = bmm(h, ws[4])
    r = jax.nn.relu(r + 2.0) - 2.0
    r = -jax.nn.relu(-r + 2.0) + 2.0
    return y, r


if __name__ == "__main__":
    key = jax.random.PRNGKey(0)
    k_param, k_sample, k_x = jax.random.split(key, 3)

    n_samples = 4
    batch = 8
    input_size = 16
    output_size = 4

    params = init_po_variational_net(k_param, input_size, output_size)
    x = jax.random.normal(k_x, (batch, input_size), dtype=jnp.float32)

    fwd = jax.jit(po_variational_net_forward, static_argnums=(2,))
    y_avg, rho = fwd(params, x, n_samples, k_sample)
    y_avg = jax.block_until_ready(y_avg)
    rho = jax.block_until_ready(rho)

    assert y_avg.shape == (n_samples, batch, output_size)
    assert rho.shape == (n_samples, batch, output_size)

    # Tight check vs a reference using the same bf16 matmul inputs / f32 accum.
    y_ref, r_ref = _reference_forward(params, x, n_samples, k_sample,
                                      matmul_dtype=jnp.bfloat16)
    assert jnp.allclose(y_avg, y_ref, atol=2e-3, rtol=2e-3), "y_avg mismatch (bf16 ref)"
    assert jnp.allclose(rho, r_ref, atol=2e-3, rtol=2e-3), "rho mismatch (bf16 ref)"

    # Loose check vs the full-f32 reference (difference = bf16 input rounding).
    y_f32, r_f32 = _reference_forward(params, x, n_samples, k_sample,
                                      matmul_dtype=jnp.float32)
    assert jnp.allclose(y_avg, y_f32, atol=5e-2, rtol=1e-1), "y_avg mismatch (f32 ref)"
    assert jnp.allclose(rho, r_f32, atol=5e-2, rtol=1e-1), "rho mismatch (f32 ref)"

    print("KERNEL_OK")
</pallas_src>

<mosaic_0001>
module attributes {stable_mosaic.version = 11 : i64} {
  func.func @_fused_net_kernel(%arg0: i32, %arg1: memref<1x8x16xbf16, #tpu.memory_space<vmem>>, %arg2: memref<1x16x512xbf16, #tpu.memory_space<vmem>>, %arg3: memref<1x1x512xf32, #tpu.memory_space<vmem>>, %arg4: memref<1x512x128xbf16, #tpu.memory_space<vmem>>, %arg5: memref<1x1x128xf32, #tpu.memory_space<vmem>>, %arg6: memref<1x128x128xbf16, #tpu.memory_space<vmem>>, %arg7: memref<1x1x128xf32, #tpu.memory_space<vmem>>, %arg8: memref<1x128x128xbf16, #tpu.memory_space<vmem>>, %arg9: memref<1x1x128xf32, #tpu.memory_space<vmem>>, %arg10: memref<1x8x128xf32, #tpu.memory_space<vmem>>) attributes {dimension_semantics = [#tpu.dimension_semantics<parallel>], iteration_bounds = array<i64: 4>, scalar_prefetch = 0 : i64, scratch_operands = 0 : i64, tpu.core_type = #tpu.core_type<tc>, window_params = [{pipeline_mode = #tpu.pipeline_mode<synchronous>, transform_indices = @transform_0, window_bounds = array<i64: 1, 8, 16>}, {transform_indices = @transform_1, window_bounds = array<i64: 1, 16, 512>}, {transform_indices = @transform_2, window_bounds = array<i64: 1, 1, 512>}, {transform_indices = @transform_3, window_bounds = array<i64: 1, 512, 128>}, {transform_indices = @transform_4, window_bounds = array<i64: 1, 1, 128>}, {transform_indices = @transform_5, window_bounds = array<i64: 1, 128, 128>}, {transform_indices = @transform_6, window_bounds = array<i64: 1, 1, 128>}, {transform_indices = @transform_7, window_bounds = array<i64: 1, 128, 128>}, {transform_indices = @transform_8, window_bounds = array<i64: 1, 1, 128>}, {transform_indices = @transform_9, window_bounds = array<i64: 1, 8, 128>}]} {
    %c0 = arith.constant 0 : index
    %c0_0 = arith.constant 0 : index
    %c0_1 = arith.constant 0 : index
    %0 = vector.load %arg1[%c0, %c0_0, %c0_1] : memref<1x8x16xbf16, #tpu.memory_space<vmem>>, vector<1x8x16xbf16>
    %1 = vector.shape_cast %0 : vector<1x8x16xbf16> to vector<8x16xbf16>
    %c0_2 = arith.constant 0 : index
    %c0_3 = arith.constant 0 : index
    %c0_4 = arith.constant 0 : index
    %2 = vector.load %arg2[%c0_2, %c0_3, %c0_4] : memref<1x16x512xbf16, #tpu.memory_space<vmem>>, vector<1x16x512xbf16>
    %3 = vector.shape_cast %2 : vector<1x16x512xbf16> to vector<16x512xbf16>
    %cst = arith.constant dense<0.000000e+00> : vector<8x512xf32>
    %4 = tpu.matmul %1, %3, %cst {dimension_numbers = #tpu.dot_dimension_numbers<[1], [0], [0], [1], [0, 0, 1, 1], [], []>} : vector<8x16xbf16>, vector<16x512xbf16>, vector<8x512xf32> -> vector<8x512xf32>
    %c0_5 = arith.constant 0 : index
    %c0_6 = arith.constant 0 : index
    %c0_7 = arith.constant 0 : index
    %5 = vector.load %arg3[%c0_5, %c0_6, %c0_7] : memref<1x1x512xf32, #tpu.memory_space<vmem>>, vector<1x1x512xf32>
    %6 = vector.shape_cast %5 : vector<1x1x512xf32> to vector<1x512xf32>
    %7 = vector.broadcast %6 : vector<1x512xf32> to vector<8x512xf32>
    %8 = arith.addf %4, %7 : vector<8x512xf32>
    %cst_8 = arith.constant 0.000000e+00 : f32
    %9 = vector.broadcast %cst_8 : f32 to vector<8x512xf32>
    %10 = arith.maximumf %8, %9 : vector<8x512xf32>
    %11 = arith.truncf %10 : vector<8x512xf32> to vector<8x512xbf16>
    %c0_9 = arith.constant 0 : index
    %c0_10 = arith.constant 0 : index
    %c0_11 = arith.constant 0 : index
    %12 = vector.load %arg4[%c0_9, %c0_10, %c0_11] : memref<1x512x128xbf16, #tpu.memory_space<vmem>>, vector<1x512x128xbf16>
    %13 = vector.shape_cast %12 : vector<1x512x128xbf16> to vector<512x128xbf16>
    %cst_12 = arith.constant dense<0.000000e+00> : vector<8x128xf32>
    %14 = tpu.matmul %11, %13, %cst_12 {dimension_numbers = #tpu.dot_dimension_numbers<[1], [0], [0], [1], [0, 0, 1, 1], [], []>} : vector<8x512xbf16>, vector<512x128xbf16>, vector<8x128xf32> -> vector<8x128xf32>
    %c0_13 = arith.constant 0 : index
    %c0_14 = arith.constant 0 : index
    %c0_15 = arith.constant 0 : index
    %15 = vector.load %arg5[%c0_13, %c0_14, %c0_15] : memref<1x1x128xf32, #tpu.memory_space<vmem>>, vector<1x1x128xf32>
    %16 = vector.shape_cast %15 : vector<1x1x128xf32> to vector<1x128xf32>
    %17 = vector.broadcast %16 : vector<1x128xf32> to vector<8x128xf32>
    %18 = arith.addf %14, %17 : vector<8x128xf32>
    %cst_16 = arith.constant 0.000000e+00 : f32
    %19 = vector.broadcast %cst_16 : f32 to vector<8x128xf32>
    %20 = arith.maximumf %18, %19 : vector<8x128xf32>
    %21 = arith.truncf %20 : vector<8x128xf32> to vector<8x128xbf16>
    %c0_17 = arith.constant 0 : index
    %c0_18 = arith.constant 0 : index
    %c0_19 = arith.constant 0 : index
    %22 = vector.load %arg6[%c0_17, %c0_18, %c0_19] : memref<1x128x128xbf16, #tpu.memory_space<vmem>>, vector<1x128x128xbf16>
    %23 = vector.shape_cast %22 : vector<1x128x128xbf16> to vector<128x128xbf16>
    %cst_20 = arith.constant dense<0.000000e+00> : vector<8x128xf32>
    %24 = tpu.matmul %21, %23, %cst_20 {dimension_numbers = #tpu.dot_dimension_numbers<[1], [0], [0], [1], [0, 0, 1, 1], [], []>} : vector<8x128xbf16>, vector<128x128xbf16>, vector<8x128xf32> -> vector<8x128xf32>
    %c0_21 = arith.constant 0 : index
    %c0_22 = arith.constant 0 : index
    %c0_23 = arith.constant 0 : index
    %25 = vector.load %arg7[%c0_21, %c0_22, %c0_23] : memref<1x1x128xf32, #tpu.memory_space<vmem>>, vector<1x1x128xf32>
    %26 = vector.shape_cast %25 : vector<1x1x128xf32> to vector<1x128xf32>
    %27 = vector.broadcast %26 : vector<1x128xf32> to vector<8x128xf32>
    %28 = arith.addf %24, %27 : vector<8x128xf32>
    %cst_24 = arith.constant 0.000000e+00 : f32
    %29 = vector.broadcast %cst_24 : f32 to vector<8x128xf32>
    %30 = arith.maximumf %28, %29 : vector<8x128xf32>
    %31 = arith.truncf %30 : vector<8x128xf32> to vector<8x128xbf16>
    %c0_25 = arith.constant 0 : index
    %c0_26 = arith.constant 0 : index
    %c0_27 = arith.constant 0 : index
    %32 = vector.load %arg8[%c0_25, %c0_26, %c0_27] : memref<1x128x128xbf16, #tpu.memory_space<vmem>>, vector<1x128x128xbf16>
    %33 = vector.shape_cast %32 : vector<1x128x128xbf16> to vector<128x128xbf16>
    %cst_28 = arith.constant dense<0.000000e+00> : vector<8x128xf32>
    %34 = tpu.matmul %31, %33, %cst_28 {dimension_numbers = #tpu.dot_dimension_numbers<[1], [0], [0], [1], [0, 0, 1, 1], [], []>} : vector<8x128xbf16>, vector<128x128xbf16>, vector<8x128xf32> -> vector<8x128xf32>
    %c0_29 = arith.constant 0 : index
    %c0_30 = arith.constant 0 : index
    %c0_31 = arith.constant 0 : index
    %35 = vector.load %arg9[%c0_29, %c0_30, %c0_31] : memref<1x1x128xf32, #tpu.memory_space<vmem>>, vector<1x1x128xf32>
    %36 = vector.shape_cast %35 : vector<1x1x128xf32> to vector<1x128xf32>
    %37 = vector.broadcast %36 : vector<1x128xf32> to vector<8x128xf32>
    %38 = arith.addf %34, %37 : vector<8x128xf32>
    %cst_32 = arith.constant 1.000000e+03 : f32
    %39 = vector.broadcast %cst_32 : f32 to vector<8x128xf32>
    %40 = arith.addf %38, %39 : vector<8x128xf32>
    %cst_33 = arith.constant 0.000000e+00 : f32
    %41 = vector.broadcast %cst_33 : f32 to vector<8x128xf32>
    %42 = arith.maximumf %40, %41 : vector<8x128xf32>
    %cst_34 = arith.constant 1.000000e+03 : f32
    %43 = vector.broadcast %cst_34 : f32 to vector<8x128xf32>
    %44 = arith.subf %42, %43 : vector<8x128xf32>
    %cst_35 = arith.constant 0.000000e+00 : f32
    %45 = vector.broadcast %cst_35 : f32 to vector<8x128xf32>
    %46 = arith.subf %45, %44 : vector<8x128xf32>
    %cst_36 = arith.constant 1.000000e+03 : f32
    %47 = vector.broadcast %cst_36 : f32 to vector<8x128xf32>
    %48 = arith.addf %46, %47 : vector<8x128xf32>
    %cst_37 = arith.constant 0.000000e+00 : f32
    %49 = vector.broadcast %cst_37 : f32 to vector<8x128xf32>
    %50 = arith.maximumf %48, %49 : vector<8x128xf32>
    %cst_38 = arith.constant 0.000000e+00 : f32
    %51 = vector.broadcast %cst_38 : f32 to vector<8x128xf32>
    %52 = arith.subf %51, %50 : vector<8x128xf32>
    %cst_39 = arith.constant 1.000000e+03 : f32
    %53 = vector.broadcast %cst_39 : f32 to vector<8x128xf32>
    %54 = arith.addf %52, %53 : vector<8x128xf32>
    %cst_40 = arith.constant 2.000000e+00 : f32
    %55 = vector.broadcast %cst_40 : f32 to vector<8x128xf32>
    %56 = arith.addf %38, %55 : vector<8x128xf32>
    %cst_41 = arith.constant 0.000000e+00 : f32
    %57 = vector.broadcast %cst_41 : f32 to vector<8x128xf32>
    %58 = arith.maximumf %56, %57 : vector<8x128xf32>
    %cst_42 = arith.constant 2.000000e+00 : f32
    %59 = vector.broadcast %cst_42 : f32 to vector<8x128xf32>
    %60 = arith.subf %58, %59 : vector<8x128xf32>
    %cst_43 = arith.constant 0.000000e+00 : f32
    %61 = vector.broadcast %cst_43 : f32 to vector<8x128xf32>
    %62 = arith.subf %61, %60 : vector<8x128xf32>
    %cst_44 = arith.constant 2.000000e+00 : f32
    %63 = vector.broadcast %cst_44 : f32 to vector<8x128xf32>
    %64 = arith.addf %62, %63 : vector<8x128xf32>
    %cst_45 = arith.constant 0.000000e+00 : f32
    %65 = vector.broadcast %cst_45 : f32 to vector<8x128xf32>
    %66 = arith.maximumf %64, %65 : vector<8x128xf32>
    %cst_46 = arith.constant 0.000000e+00 : f32
    %67 = vector.broadcast %cst_46 : f32 to vector<8x128xf32>
    %68 = arith.subf %67, %66 : vector<8x128xf32>
    %cst_47 = arith.constant 2.000000e+00 : f32
    %69 = vector.broadcast %cst_47 : f32 to vector<8x128xf32>
    %70 = arith.addf %68, %69 : vector<8x128xf32>
    %71 = tpu.iota {dimensions = array<i32: 1>} : vector<8x128xi32>
    %c64_i32 = arith.constant 64 : i32
    %72 = vector.broadcast %c64_i32 : i32 to vector<8x128xi32>
    %73 = arith.cmpi slt, %71, %72 : vector<8x128xi32>
    %74 = arith.select %73, %54, %70 : vector<8x128xi1>, vector<8x128xf32>
    %c0_48 = arith.constant 0 : index
    %c0_49 = arith.constant 0 : index
    %c0_50 = arith.constant 0 : index
    %75 = vector.load %arg10[%c0_48, %c0_49, %c0_50] : memref<1x8x128xf32, #tpu.memory_space<vmem>>, vector<1x8x128xf32>
    %76 = vector.shape_cast %75 : vector<1x8x128xf32> to vector<8x128xf32>
    %77 = vector.shape_cast %74 : vector<8x128xf32> to vector<1x8x128xf32>
    tpu.vector_store %arg10[%c0_48, %c0_49, %c0_50], %77 {strides = array<i32>} : memref<1x8x128xf32, #tpu.memory_space<vmem>>, vector<1x8x128xf32>,
    return
  }
  func.func @transform_0(%arg0: i32) -> (i32, i32, i32) {
    %c0_i32 = arith.constant 0 : i32
    %c0_i32_0 = arith.constant 0 : i32
    %c0_i32_1 = arith.constant 0 : i32
    %c0_i32_2 = arith.constant 0 : i32
    return %c0_i32, %c0_i32_0, %c0_i32_1 : i32, i32, i32
  }
  func.func @transform_1(%arg0: i32) -> (i32, i32, i32) {
    %c0_i32 = arith.constant 0 : i32
    %c0_i32_0 = arith.constant 0 : i32
    %c0_i32_1 = arith.constant 0 : i32
    return %arg0, %c0_i32, %c0_i32_0 : i32, i32, i32
  }
  func.func @transform_2(%arg0: i32) -> (i32, i32, i32) {
    %c0_i32 = arith.constant 0 : i32
    %c0_i32_0 = arith.constant 0 : i32
    %c0_i32_1 = arith.constant 0 : i32
    return %arg0, %c0_i32, %c0_i32_0 : i32, i32, i32
  }
  func.func @transform_3(%arg0: i32) -> (i32, i32, i32) {
    %c0_i32 = arith.constant 0 : i32
    %c0_i32_0 = arith.constant 0 : i32
    %c0_i32_1 = arith.constant 0 : i32
    return %arg0, %c0_i32, %c0_i32_0 : i32, i32, i32
  }
  func.func @transform_4(%arg0: i32) -> (i32, i32, i32) {
    %c0_i32 = arith.constant 0 : i32
    %c0_i32_0 = arith.constant 0 : i32
    %c0_i32_1 = arith.constant 0 : i32
    return %arg0, %c0_i32, %c0_i32_0 : i32, i32, i32
  }
  func.func @transform_5(%arg0: i32) -> (i32, i32, i32) {
    %c0_i32 = arith.constant 0 : i32
    %c0_i32_0 = arith.constant 0 : i32
    %c0_i32_1 = arith.constant 0 : i32
    return %arg0, %c0_i32, %c0_i32_0 : i32, i32, i32
  }
  func.func @transform_6(%arg0: i32) -> (i32, i32, i32) {
    %c0_i32 = arith.constant 0 : i32
    %c0_i32_0 = arith.constant 0 : i32
    %c0_i32_1 = arith.constant 0 : i32
    return %arg0, %c0_i32, %c0_i32_0 : i32, i32, i32
  }
  func.func @transform_7(%arg0: i32) -> (i32, i32, i32) {
    %c0_i32 = arith.constant 0 : i32
    %c0_i32_0 = arith.constant 0 : i32
    %c0_i32_1 = arith.constant 0 : i32
    return %arg0, %c0_i32, %c0_i32_0 : i32, i32, i32
  }
  func.func @transform_8(%arg0: i32) -> (i32, i32, i32) {
    %c0_i32 = arith.constant 0 : i32
    %c0_i32_0 = arith.constant 0 : i32
    %c0_i32_1 = arith.constant 0 : i32
    return %arg0, %c0_i32, %c0_i32_0 : i32, i32, i32
  }
  func.func @transform_9(%arg0: i32) -> (i32, i32, i32) {
    %c0_i32 = arith.constant 0 : i32
    %c0_i32_0 = arith.constant 0 : i32
    %c0_i32_1 = arith.constant 0 : i32
    return %arg0, %c0_i32, %c0_i32_0 : i32, i32, i32
  }
}

</mosaic_0001>

<bundles_post_ra>
// kernel: po_variational_net_forward.3
= control target key start
LH: loop header
LB: loop body
LE: loop exit
PB: predicated region body
PF: predicated region fallthrough
CT: control target
= control target key end

     0   :  { %s1618_s30 = smov 0   ;;  %s1743_s0 = inlined_call_operand.vmem [shape: bf16[1,8,16], index: 0, kind: input, shape index: {}]   ;;  %s1744_s1 = inlined_call_operand.vmem [shape: bf16[4,16,512], index: 1, kind: input, shape index: {}]   ;;  %s1745_s2 = inlined_call_operand.vmem [shape: f32[4,1,512], index: 2, kind: input, shape index: {}]   ;;  %s1746_s3 = inlined_call_operand.vmem [shape: bf16[4,512,128], index: 3, kind: input, shape index: {}]   ;;  %s1747_s4 = inlined_call_operand.vmem [shape: f32[4,1,128], index: 4, kind: input, shape index: {}]   ;;  %s1748_s5 = inlined_call_operand.vmem [shape: bf16[4,128,128], index: 5, kind: input, shape index: {}]   ;;  %s1749_s6 = inlined_call_operand.vmem [shape: f32[4,1,128], index: 6, kind: input, shape index: {}]   ;;  %s1750_s7 = inlined_call_operand.vmem [shape: bf16[4,128,128], index: 7, kind: input, shape index: {}]   ;;  %s1751_s8 = inlined_call_operand.vmem [shape: f32[4,1,128], index: 8, kind: input, shape index: {}]   ;;  %s1752_s9 = inlined_call_operand.vmem [shape: f32[4,8,128], index: 9, kind: output, shape index: {}]  }
   0x1 LB: > { %s1310_s10 = sadd.s32 4294967295, %s1563_s30   ;;  %p1314_p0 = scmp.ge.s32.totalorder %s1563_s30, 1  ;;  %s1563_s30 = sphi %s1618_s30, %s19_s30  }
   0x2   : > { %p350_p1 = scmp.lt.s32.totalorder %s1563_s30, 5 }
   0x4   : > { %p351_p2 = pnand %p1314_p0, %p350_p1 }
   0x5   : > { %p413_p3 = scmp.lt.s32.totalorder (!%p351_p2), %s1310_s10, 3  ;;  %v1565_v0 = vmov (!%p351_p2), 0   ;;  %v451_v5 = vld [vmem:[%s1743_s0] sm:$0xf] (!%p351_p2)  ;;  %vm498_vm0 = vcmask (!%p351_p2), 130048   ;;  %v1566_v38 = vmov (!%p351_p2), 0.0   ;;  %v458_v39 = vlaneseq (!%p351_p2) }
   0x6   : > { %354 = sbr.rel (%p351_p2) target bundleno = 914 (0x392), region = 56  ;;  %534 = vmatprep.mubr.bf16.mxu0 (!%p351_p2), %v1565_v0  ;;  %575 = vmatprep.mubr.bf16.mxu1 (!%p351_p2), %v1565_v0  ;;  %vm1567_vm1 = vmmov (!%p351_p2), 0  }
   0x7   : > { %v459_v40 = vshrl.u32 (!%p351_p2), %v458_v39, 7 }
   0x9   : > { %v460_v41 = vsub.s32 (!%p351_p2), 0, %v459_v40  ;;  %v468_v42 = vsub.s32 (!%p351_p2), 2, %v459_v40  ;;  %v464_v44 = vsub.s32 (!%p351_p2), 1, %v459_v40  ;;  %v472_v45 = vsub.s32 (!%p351_p2), 3, %v459_v40 }
   0xd   : > { %s1754_s10 = smov (!%p413_p3, %s1310_s10), 3 }
   0xe   : > { %s1386_s11 = sshll.u32 %s1754_s10, 5  ;;  %s1387_s12 = sshll.u32 %s1754_s10, 8 }
   0xf   : > { %s417_s15 = scalar_lea.vmem %s1744_s1, %s1386_s11  ;;  %s1636_s18 = scalar_lea.vmem %s1746_s3, %s1387_s12 }
  0x10   : > { %v1503_v1 = vld [vmem:[%s417_s15 + $0x4] ss:$16 sps:$4 sm:$0xff]   ;;  %v1505_v2 = vld [vmem:[%s417_s15 + $0xc] ss:$16 sps:$4 sm:$0xff]   ;;  %v1507_v3 = vld [vmem:[%s417_s15] ss:$16 sps:$4 sm:$0xff]  }
  0x11   : > { %502 = vmatprep.subr.bf16.mxu0 %v1503_v1  ;;  %v1508_v4 = vld [vmem:[%s417_s15 + $0x8] ss:$16 sps:$4 sm:$0xff]   ;;  %543 = vmatprep.subr.bf16.mxu1 %v1505_v2  ;;  %v1509_v6 = vld [vmem:[%s1636_s18 + $0x40] sm:$0xff]   ;;  %v1517_v14 = vld [vmem:[%s1636_s18 + $0x50] sm:$0xff]   ;;  %s1388_s21 = sshll.u32 %s1754_s10, 6  ;;  %s1317_s28 = sshll.u32 %s1754_s10, 2 }
  0x12   : > { %503 = vmatpush1.bf16.msra.mxu0 %v1507_v3  ;;  %544 = vmatpush1.bf16.msra.mxu1 %v1508_v4  ;;  %v1510_v7 = vld [vmem:[%s1636_s18 + $0xc0] sm:$0xff]   ;;  %v1513_v10 = vld [vmem:[%s1636_s18 + $0x48] sm:$0xff]   ;;  %v1518_v15 = vld [vmem:[%s1636_s18 + $0xd0] sm:$0xff]   ;;  %s1669_s24 = scalar_lea.vmem %s1748_s5, %s1388_s21  ;;  %s1674_s27 = scalar_lea.vmem %s1750_s7, %s1388_s21 }
  0x13   : > { %1390 = vmatprep.subr.bf16.mxu0 %v1509_v6  ;;  %v1511_v8 = vld [vmem:[%s1636_s18] sm:$0xff]   ;;  %1412 = vmatprep.subr.bf16.mxu1 %v1510_v7  ;;  %v1514_v11 = vld [vmem:[%s1636_s18 + $0xc8] sm:$0xff]   ;;  %v1519_v16 = vld [vmem:[%s1636_s18 + $0x10] sm:$0xff]   ;;  %s421_s12 = scalar_lea.vmem %s1745_s2, %s1317_s28  ;;  %s429_s15 = scalar_lea.vmem %s1747_s4, %s1754_s10 }
  0x14   : > { %v1512_v9 = vld [vmem:[%s1636_s18 + $0x80] sm:$0xff]   ;;  %v1515_v12 = vld [vmem:[%s1636_s18 + $0x8] sm:$0xff]   ;;  %v1520_v17 = vld [vmem:[%s1636_s18 + $0x90] sm:$0xff]   ;;  %s445_s21 = scalar_lea.vmem %s1751_s8, %s1754_s10  ;;  %s1324_s22 = sshll.u32 %s1754_s10, 3 }
  0x15   : > { %1329 = vmatmul.mubr.msk.bf16.vlgmr.msra.gmra.mrb[0].mxu0 %vm498_vm0, %v451_v5  ;;  %1330 = vmatmul.mubr.msk.bf16.vlgmr.msra.gmra.mrb[0].mxu1 %vm498_vm0, %v451_v5  ;;  %v1516_v13 = vld [vmem:[%s1636_s18 + $0x88] sm:$0xff]   ;;  %v1521_v18 = vld [vmem:[%s1636_s18 + $0x58] sm:$0xff]   ;;  %v1525_v22 = vld [vmem:[%s1636_s18 + $0x60] sm:$0xff]   ;;  %s449_s25 = scalar_lea.vmem %s1752_s9, %s1324_s22 }
  0x16   : > { %1391 = vmatpush3.bf16.msra.mxu0 %v1511_v8  ;;  %1413 = vmatpush3.bf16.msra.mxu1 %v1512_v9  ;;  %v1522_v19 = vld [vmem:[%s1636_s18 + $0xd8] sm:$0xff]   ;;  %v1526_v23 = vld [vmem:[%s1636_s18 + $0xe0] sm:$0xff]   ;;  %v1529_v26 = vld [vmem:[%s1636_s18 + $0x68] sm:$0xff]  }
  0x17   : > { %1392 = vmatprep.subr.bf16.mxu0 %v1513_v10  ;;  %1414 = vmatprep.subr.bf16.mxu1 %v1514_v11  ;;  %v1523_v20 = vld [vmem:[%s1636_s18 + $0x18] sm:$0xff]   ;;  %v1527_v24 = vld [vmem:[%s1636_s18 + $0x20] sm:$0xff]   ;;  %v1530_v27 = vld [vmem:[%s1636_s18 + $0xe8] sm:$0xff]  }
  0x18   : > { %v1524_v21 = vld [vmem:[%s1636_s18 + $0x98] sm:$0xff]   ;;  %v1528_v25 = vld [vmem:[%s1636_s18 + $0xa0] sm:$0xff]   ;;  %v1531_v28 = vld [vmem:[%s1636_s18 + $0x28] sm:$0xff]  }
  0x19   : > { %v1532_v29 = vld [vmem:[%s1636_s18 + $0xa8] sm:$0xff]   ;;  %v1533_v30 = vld [vmem:[%s1636_s18 + $0x70] sm:$0xff]   ;;  %v1537_v34 = vld [vmem:[%s1636_s18 + $0x78] sm:$0xff]  }
  0x1a   : > { %1393 = vmatpush3.bf16.msra.mxu0 %v1515_v12  ;;  %1415 = vmatpush3.bf16.msra.mxu1 %v1516_v13  ;;  %v1534_v31 = vld [vmem:[%s1636_s18 + $0xf0] sm:$0xff]   ;;  %v1538_v35 = vld [vmem:[%s1636_s18 + $0xf8] sm:$0xff]   ;;  %v456_v43 = vld [vmem:[%s421_s12] sm:$0xf] }
  0x1b   : > { %1394 = vmatprep.subr.bf16.mxu0 %v1517_v14  ;;  %1416 = vmatprep.subr.bf16.mxu1 %v1518_v15  ;;  %v1535_v32 = vld [vmem:[%s1636_s18 + $0x30] sm:$0xff]   ;;  %v1539_v36 = vld [vmem:[%s1636_s18 + $0x38] sm:$0xff]   ;;  %v461_v46 = vrot.slane %v456_v43, %v460_v41  ;;  %v469_v47 = vrot.slane %v456_v43, %v468_v42  ;;  %v465_v48 = vrot.slane %v456_v43, %v464_v44  ;;  %v1541_v5 = vld [vmem:[%s1669_s24] sm:$0xff]  }
  0x1c   : > { %v1536_v33 = vld [vmem:[%s1636_s18 + $0xb0] sm:$0xff]   ;;  %v1540_v37 = vld [vmem:[%s1636_s18 + $0xb8] sm:$0xff]   ;;  %v473_v49 = vrot.slane %v456_v43, %v472_v45  ;;  %v1542_v7 = vld [vmem:[%s1669_s24 + $0x8] sm:$0xff]   ;;  %s437_s18 = scalar_lea.vmem %s1749_s6, %s1754_s10 }
  0x1d   : > { %v1543_v8 = vld [vmem:[%s1669_s24 + $0x10] sm:$0xff]   ;;  %v1544_v9 = vld [vmem:[%s1669_s24 + $0x18] sm:$0xff]   ;;  %v1545_v10 = vld [vmem:[%s1669_s24 + $0x20] sm:$0xff]  }
  0x1e   : > { %1395 = vmatpush3.bf16.msra.mxu0 %v1519_v16  ;;  %1417 = vmatpush3.bf16.msra.mxu1 %v1520_v17  ;;  %v1546_v11 = vld [vmem:[%s1669_s24 + $0x28] sm:$0xff]   ;;  %v1547_v12 = vld [vmem:[%s1669_s24 + $0x30] sm:$0xff]   ;;  %v1548_v13 = vld [vmem:[%s1669_s24 + $0x38] sm:$0xff]  }
  0x1f   : > { %1396 = vmatprep.subr.bf16.mxu0 %v1521_v18  ;;  %1418 = vmatprep.subr.bf16.mxu1 %v1522_v19  ;;  %v1549_v14 = vld [vmem:[%s1674_s27] sm:$0xff]   ;;  %v1550_v15 = vld [vmem:[%s1674_s27 + $0x8] sm:$0xff]   ;;  %v1551_v16 = vld [vmem:[%s1674_s27 + $0x10] sm:$0xff]  }
  0x20   : > { %v1552_v17 = vld [vmem:[%s1674_s27 + $0x18] sm:$0xff]   ;;  %v1553_v18 = vld [vmem:[%s1674_s27 + $0x20] sm:$0xff]   ;;  %v1554_v19 = vld [vmem:[%s1674_s27 + $0x28] sm:$0xff]  }
  0x22   : > { %1397 = vmatpush3.bf16.msra.mxu0 %v1523_v20  ;;  %1419 = vmatpush3.bf16.msra.mxu1 %v1524_v21 }
  0x23   : > { %1398 = vmatprep.subr.bf16.mxu0 %v1525_v22  ;;  %1420 = vmatprep.subr.bf16.mxu1 %v1526_v23  ;;  %v1331_v22 = vld [vmem:[%s429_s15] ss:$0 sm:$0xff] }
  0x26   : > { %1399 = vmatpush3.bf16.msra.mxu0 %v1527_v24  ;;  %1421 = vmatpush3.bf16.msra.mxu1 %v1528_v25 }
  0x27   : > { %1400 = vmatprep.subr.bf16.mxu0 %v1529_v26  ;;  %1422 = vmatprep.subr.bf16.mxu1 %v1530_v27 }
  0x2a   : > { %1401 = vmatpush3.bf16.msra.mxu0 %v1531_v28  ;;  %1423 = vmatpush3.bf16.msra.mxu1 %v1532_v29 }
  0x2b   : > { %1402 = vmatprep.subr.bf16.mxu0 %v1533_v30  ;;  %1424 = vmatprep.subr.bf16.mxu1 %v1534_v31 }
  0x2e   : > { %1403 = vmatpush3.bf16.msra.mxu0 %v1535_v32  ;;  %1425 = vmatpush3.bf16.msra.mxu1 %v1536_v33 }
  0x2f   : > { %1404 = vmatprep.subr.bf16.mxu0 %v1537_v34  ;;  %1426 = vmatprep.subr.bf16.mxu1 %v1538_v35  ;;  %v1555_v35 = vld [vmem:[%s1674_s27 + $0x30] sm:$0xff]  }
  0x32   : > { %1405 = vmatpush3.bf16.msra.mxu0 %v1539_v36  ;;  %1427 = vmatpush3.bf16.msra.mxu1 %v1540_v37  ;;  %v1556_v36 = vld [vmem:[%s1674_s27 + $0x38] sm:$0xff]   ;;  %v1364_v37 = vld [vmem:[%s437_s18] ss:$0 sm:$0xff] }
  0x33   : > { %1452 = vmatprep.subr.bf16.mxu0 %v1566_v38  ;;  %1472 = vmatprep.subr.bf16.mxu1 %v1566_v38 }
  0xe8   : > { %v536_v50 = vpop.f32.mrb[0].mxu0  ;;  %v577_v51 = vpop.f32.mrb[0].mxu1 }
  0xe9   : > { %v537_v52 = vadd.f32 %v536_v50, %v461_v46  ;;  %v578_v53 = vadd.f32 %v577_v51, %v469_v47  ;;  %v538_v54 = vpop.f32.mrb[1].mxu0  ;;  %v579_v55 = vpop.f32.mrb[1].mxu1 }
  0xea   : > { %v539_v56 = vadd.f32 %v538_v54, %v465_v48  ;;  %v580_v57 = vadd.f32 %v579_v55, %v473_v49  ;;  %v540_v58 = vpop.f32.mrb[2].mxu0  ;;  %v581_v59 = vpop.f32.mrb[2].mxu1 }
  0xeb   : > { %v584_v60 = vmax.f32 %v537_v52, 0.0  ;;  %v586_v61 = vmax.f32 %v578_v53, 0.0  ;;  %v541_v62 = vpop.f32.mrb[3].mxu0  ;;  %v582_v63 = vpop.f32.mrb[3].mxu1 }
  0xec   : > { %v585_v0 = vmax.f32 %v539_v56, 0.0  ;;  %v587_v1 = vmax.f32 %v580_v57, 0.0  ;;  %v1178_v62 = vand.u32 127, %v458_v39 }
  0xed   : > { %v590_v2 = vpack.c.bf16 %v586_v61, %v586_v61  ;;  %v588_v6 = vpack.c.bf16 %v584_v60, %v584_v60 }
  0xee   : > { %v589_v3 = vpack.c.bf16 %v585_v0, %v585_v0  ;;  %v591_v4 = vpack.c.bf16 %v587_v1, %v587_v1  ;;  %vm1179_vm2 = vcmp.lt.s32.totalorder %v1178_v62, 64 }
  0xf0   : > { %887 = vmatprep.mubr.bf16.mxu0 %v589_v3  ;;  %927 = vmatprep.mubr.bf16.mxu1 %v591_v4 }
  0xf1   : > { %888 = vmatmul.mubr.bf16.vlgmr.msra.gmra.mrb[4].mxu0 %v588_v6  ;;  %928 = vmatmul.mubr.bf16.vlgmr.msra.gmra.mrb[4].mxu1 %v590_v2 }
  0xf2   : > { %1453 = vmatpush3.bf16.msra.mxu0 %v1541_v5  ;;  %1468 = vmatprep.mubr.msk.bf16.mxu0 %vm1567_vm1, %v1566_v38 }
  0xf3   : > { %1454 = vmatprep.subr.bf16.mxu0 %v1566_v38  ;;  %1488 = vmatprep.mubr.msk.bf16.mxu1 %vm1567_vm1, %v1566_v38 }
  0xf4   : > { %1473 = vmatpush3.bf16.msra.mxu1 %v1549_v14 }
  0xf5   : > { %1474 = vmatprep.subr.bf16.mxu1 %v1566_v38 }
  0xf6   : > { %1455 = vmatpush3.bf16.msra.mxu0 %v1542_v7 }
  0xf7   : > { %1456 = vmatprep.subr.bf16.mxu0 %v1566_v38 }
  0xf8   : > { %1475 = vmatpush3.bf16.msra.mxu1 %v1550_v15 }
  0xf9   : > { %1476 = vmatprep.subr.bf16.mxu1 %v1566_v38 }
  0xfa   : > { %1457 = vmatpush3.bf16.msra.mxu0 %v1543_v8 }
  0xfb   : > { %1458 = vmatprep.subr.bf16.mxu0 %v1566_v38 }
  0xfc   : > { %1477 = vmatpush3.bf16.msra.mxu1 %v1551_v16 }
  0xfd   : > { %1478 = vmatprep.subr.bf16.mxu1 %v1566_v38 }
  0xfe   : > { %1459 = vmatpush3.bf16.msra.mxu0 %v1544_v9 }
  0xff   : > { %1460 = vmatprep.subr.bf16.mxu0 %v1566_v38 }
 0x100   : > { %1479 = vmatpush3.bf16.msra.mxu1 %v1552_v17 }
 0x101   : > { %1480 = vmatprep.subr.bf16.mxu1 %v1566_v38 }
 0x102   : > { %1461 = vmatpush3.bf16.msra.mxu0 %v1545_v10 }
 0x103   : > { %1462 = vmatprep.subr.bf16.mxu0 %v1566_v38 }
 0x104   : > { %1481 = vmatpush3.bf16.msra.mxu1 %v1553_v18 }
 0x105   : > { %1482 = vmatprep.subr.bf16.mxu1 %v1566_v38 }
 0x106   : > { %1463 = vmatpush3.bf16.msra.mxu0 %v1546_v11 }
 0x107   : > { %1464 = vmatprep.subr.bf16.mxu0 %v1566_v38 }
 0x108   : > { %1483 = vmatpush3.bf16.msra.mxu1 %v1554_v19 }
 0x109   : > { %1484 = vmatprep.subr.bf16.mxu1 %v1566_v38 }
 0x10a   : > { %1465 = vmatpush3.bf16.msra.mxu0 %v1547_v12 }
 0x10b   : > { %1466 = vmatprep.subr.bf16.mxu0 %v1566_v38 }
 0x10c   : > { %1485 = vmatpush3.bf16.msra.mxu1 %v1555_v35 }
 0x10d   : > { %1486 = vmatprep.subr.bf16.mxu1 %v1566_v38  ;;  %v1373_v38 = vld [vmem:[%s445_s21] ss:$0 sm:$0xff] }
 0x10e   : > { %1467 = vmatpush3.bf16.msra.mxu0 %v1548_v13 }
 0x110   : > { %1487 = vmatpush3.bf16.msra.mxu1 %v1556_v36 }
 0x1c4   : > { %v1406_v20 = vpop.f32.mrb[4].mxu0  ;;  %v1428_v21 = vpop.f32.mrb[4].mxu1 }
 0x1c5   : > { %v1407_v23 = vpop.f32.mrb[5].mxu0  ;;  %v1429_v24 = vpop.f32.mrb[5].mxu1 }
 0x1c6   : > { %v1408_v25 = vadd.f32 %v1407_v23, %v1406_v20  ;;  %v1430_v26 = vadd.f32 %v1429_v24, %v1428_v21  ;;  %v1409_v27 = vpop.f32.mrb[6].mxu0  ;;  %v1431_v28 = vpop.f32.mrb[6].mxu1 }
 0x1c7   : > { %v1410_v29 = vpop.f32.mrb[7].mxu0  ;;  %v1432_v30 = vpop.f32.mrb[7].mxu1 }
 0x1c8   : > { %v890_v31 = vadd.f32 %v1408_v25, %v1331_v22 }
 0x1ca   : > { %v930_v32 = vadd.f32 %v1430_v26, %v890_v31 }
 0x1cc   : > { %v935_v33 = vmax.f32 %v930_v32, 0.0 }
 0x1ce   : > { %v936_v34 = vpack.c.bf16 %v935_v33, %v935_v33 }
 0x1d0   : > { %1469 = vmatmul.mubr.bf16.vlgmr.msra.gmra.mrb[8].mxu0 %v936_v34 }
 0x2a3   : > { %v1042_v40 = vpop.f32.mrb[8].mxu0 }
 0x2a4   : > { %v1043_v41 = vadd.f32 %v1364_v37, %v1042_v40  ;;  %v1470_v42 = vpop.f32.mrb[9].mxu0 }
 0x2a5   : > { %v1045_v43 = vpop.f32.mrb[10].mxu0 }
 0x2a6   : > { %v1048_v44 = vmax.f32 %v1043_v41, 0.0  ;;  %v1471_v45 = vpop.f32.mrb[11].mxu0 }
 0x2a8   : > { %v1049_v46 = vpack.c.bf16 %v1048_v44, %v1048_v44 }
 0x2aa   : > { %1489 = vmatmul.mubr.bf16.vlgmr.msra.gmra.mrb[8].mxu1 %v1049_v46 }
 0x37d   : > { %v1155_v47 = vpop.f32.mrb[8].mxu1 }
 0x37e   : > { %v1156_v48 = vadd.f32 %v1373_v38, %v1155_v47  ;;  %v1490_v49 = vpop.f32.mrb[9].mxu1 }
 0x37f   : > { %v1158_v50 = vpop.f32.mrb[10].mxu1 }
 0x380   : > { %v1161_v51 = vadd.f32 1000.0, %v1156_v48  ;;  %v1169_v52 = vadd.f32 2.0, %v1156_v48  ;;  %v1491_v53 = vpop.f32.mrb[11].mxu1 }
 0x382   : > { %v1162_v54 = vmax.f32 %v1161_v51, 0.0  ;;  %v1170_v55 = vmax.f32 %v1169_v52, 0.0 }
 0x384   : > { %v1382_v56 = vadd.f32 -1000.0, %v1162_v54  ;;  %v1383_v57 = vadd.f32 -2.0, %v1170_v55 }
 0x386   : > { %v1164_v58 = vsub.f32 0.0, %v1382_v56  ;;  %v1172_v59 = vsub.f32 0.0, %v1383_v57 }
 0x388   : > { %v1165_v60 = vadd.f32 1000.0, %v1164_v58  ;;  %v1173_v61 = vadd.f32 2.0, %v1172_v59 }
 0x38a   : > { %v1166_v63 = vmax.f32 %v1165_v60, 0.0  ;;  %v1174_v0 = vmax.f32 %v1173_v61, 0.0 }
 0x38c   : > { %v1167_v1 = vsub.f32 0.0, %v1166_v63  ;;  %v1175_v2 = vsub.f32 0.0, %v1174_v0 }
 0x38e   : > { %v1168_v3 = vadd.f32 1000.0, %v1167_v1  ;;  %v1176_v4 = vadd.f32 2.0, %v1175_v2 }
 0x390   : > { %v1180_v5 = vsel %vm1179_vm2, %v1168_v3, %v1176_v4 }
 0x391   : > { %1181 = vst [vmem:[%s449_s25] sm:$0xff] %v1180_v5 }
 0x392 PF: > { %s19_s30 = sadd.s32 1, %s1563_s30  }
 0x393   : > { %p16_p4 = scmp.ge.s32.totalorder %s19_s30, 6  }
 0x395   :  { %18 = sbr.rel (!%p16_p4) target bundleno = 1 (0x1), region = 107 }

</bundles_post_ra>
